<compile_context>
chip_gen: v7x
topology: tpu7x:2x2x1
jax: 0.10.0
libtpu: 0.0.40
codegen_flags: <defaults>
</compile_context>

<pallas_src>
import functools

import jax
import jax.numpy as jnp
from jax.experimental import pallas as pl
from jax.experimental.pallas import tpu as pltpu

_EPS = 1e-12  # matches torch.nn.functional.normalize default eps


def _ntxent_kernel(rhi_ref, rlo_ref, chi_ref, clo_ref, pos_ref, o_ref, denom_ref, *, inv_t):
    """Grid = (row_tiles, col_tiles); columns are the sequential ("arbitrary") reduction axis.

    rhi/rlo  : (TR, Dp) bf16 hi/lo split of the normalized, 1/sqrt(T)-scaled row tile
    chi/clo  : (TC, Dp) bf16 hi/lo split of the column tile (same underlying arrays)
    pos_ref  : (TR, 1)  f32 positives sim[k, (k+B) mod 2B] / T (precomputed per row)
    o_ref    : (TR, 1)  per-row loss, written on the last column step
    denom_ref: (TR, 1)  VMEM scratch — running sum_{m != k} exp(sim[k, m]/T - 1/T)
    """
    j = pl.program_id(1)

    @pl.when(j == 0)
    def _init():
        denom_ref[...] = jnp.zeros_like(denom_ref)

    tr = rhi_ref.shape[0]
    tc = chi_ref.shape[0]
    dn = (((1,), (1,)), ((), ()))  # contract the feature axis of both operands (A @ B^T)

    r_hi, r_lo = rhi_ref[...], rlo_ref[...]
    c_hi, c_lo = chi_ref[...], clo_ref[...]
    # Three single-pass bf16 MXU matmuls ~= bf16_3x (Precision.HIGH) accuracy at half the cost
    # of the old HIGHEST (6-pass f32) contraction.  Accumulation stays in f32.
    s = jax.lax.dot_general(r_hi, c_hi, dn, preferred_element_type=jnp.float32)
    s = s + jax.lax.dot_general(r_hi, c_lo, dn, preferred_element_type=jnp.float32)
    s = s + jax.lax.dot_general(r_lo, c_hi, dn, preferred_element_type=jnp.float32)

    # Row max of sim/T is the diagonal (== 1/T): subtract it before exp (overflow-safe for
    # small temperatures), and mask the diagonal exactly inside the overlapping tile so the
    # denominator never contains (and never has to cancel) the largest term.
    rows = pl.program_id(0) * tr + jax.lax.broadcasted_iota(jnp.int32, (tr, tc), 0)
    cols = j * tc + jax.lax.broadcasted_iota(jnp.int32, (tr, tc), 1)
    e = jnp.where(rows == cols, 0.0, jnp.exp(s - inv_t))
    denom_ref[...] += jnp.sum(e, axis=1, keepdims=True)

    @pl.when(j == pl.num_programs(1) - 1)
    def _finalize():
        denom = jnp.maximum(denom_ref[...], 1e-37)  # guard against total underflow
        # -log(exp(pos) / denominator) == log(denominator) - pos ; undo the 1/T shift.
        o_ref[...] = jnp.log(denom) + inv_t - pos_ref[...]


def _vmem_capacity_bytes() -> int:
    try:
        return int(pltpu.get_tpu_info().vmem_capacity_bytes)
    except Exception:
        return 64 * 1024 * 1024  # conservative fallback = v7x per-TensorCore VMEM


def _pick_tile(n: int, cap: int) -> int:
    """Largest tile <= cap dividing n; prefer multiples of 128 (lane/MXU friendly), else 8."""
    cap = max(8, min(n, cap))
    best = None
    for t in range(128, cap + 1, 128):
        if n % t == 0:
            best = t
    if best is None:
        for t in range(8, cap + 1, 8):
            if n % t == 0:
                best = t
    return best if best is not None else n


def ntxent_loss(z_i: jax.Array, z_j: jax.Array, temperature: float,
                *, row_tile: int | None = None, col_tile: int | None = None) -> jax.Array:
    """JAX/Pallas equivalent of NTXentLoss(temperature).forward(z_i, z_j)."""
    assert z_i.shape == z_j.shape and z_i.ndim == 2
    B, D = z_i.shape
    # TODO(synk): batch sizes not divisible by 8 need a masked / padded fallback path.
    assert B % 8 == 0, "NT-Xent Pallas kernel requires batch_size % 8 == 0"
    N = 2 * B
    inv_t = 1.0 / float(temperature)
    inv_sqrt_t = float(temperature) ** -0.5

    # --- single O(N*D) wrapper pass (fused by XLA): concat, L2-normalize (torch eps), fold in
    #     1/sqrt(T), compute per-row positives, pad K to a lane-dense 128 multiple, split into
    #     bf16 hi/lo slabs (hi + lo reproduces the f32 value to ~2^-18 relative).
    z = jnp.concatenate([z_i, z_j], axis=0).astype(jnp.float32)
    norm = jnp.sqrt(jnp.sum(z * z, axis=1, keepdims=True))
    zn = z * (inv_sqrt_t / jnp.maximum(norm, _EPS))             # dot(zn, zn^T) == sim / T

    partner = jnp.concatenate([zn[B:], zn[:B]], axis=0)         # rows (k + B) mod 2B
    pos = jnp.sum(zn * partner, axis=1, keepdims=True)          # positives sim[k, k+-B] / T

    Dp = ((D + 127) // 128) * 128
    if Dp != D:
        zn = jnp.pad(zn, ((0, 0), (0, Dp - D)))                 # zero cols: no effect on dots
    z_hi = zn.astype(jnp.bfloat16)
    z_lo = (zn - z_hi.astype(jnp.float32)).astype(jnp.bfloat16)

    # --- VMEM-aware tiling (v5e/v6e: 128 MiB, v7x: 64 MiB per TensorCore).
    vmem_cap = _vmem_capacity_bytes()
    # Column slab: hi + lo bf16, double-buffered -> 8 bytes / element; resident (TC == N,
    # fetched once) whenever ~35% of VMEM allows.
    tc_cap = max(8, int(vmem_cap * 0.35) // (8 * Dp))
    TC = col_tile if col_tile is not None else _pick_tile(N, tc_cap)
    # Row tile: cap 512 (v7x) / 1024 (v5e/v6e); TR <= B keeps nrt >= 2 for the two v7x TCs.
    row_cap = 1024 if vmem_cap >= 96 * 1024 * 1024 else 512
    row_budget = int(vmem_cap * 0.45)
    while row_cap > 8 and (8 * row_cap * Dp + 16 * row_cap * TC) > row_budget:
        row_cap //= 2
    TR = row_tile if row_tile is not None else _pick_tile(B, row_cap)

    assert B % TR == 0 and TR % 8 == 0, (B, TR)
    assert N % TC == 0 and TC % 8 == 0, (N, TC)
    nrt, nct = N // TR, N // TC

    est = 8 * TR * Dp + 8 * TC * Dp + 16 * TR * TC + 64 * TR + 4096
    vmem_limit = int(min(int(vmem_cap * 0.9), max(32 * 1024 * 1024, 2 * est)))

    col_passes = 1 if nct == 1 else nrt        # resident column slab is only fetched once
    cost = pl.CostEstimate(
        flops=int(3 * 2 * N * N * Dp),         # 3 bf16 passes: hi*hi + hi*lo + lo*hi
        transcendentals=int(N * N),
        bytes_accessed=int(4 * N * Dp * (1 + col_passes) + 16 * N),
    )

    grid_spec = pltpu.PrefetchScalarGridSpec(
        num_scalar_prefetch=0,
        grid=(nrt, nct),
        in_specs=[
            pl.BlockSpec((TR, Dp), lambda i, j: (i, 0)),   # row tile, hi
            pl.BlockSpec((TR, Dp), lambda i, j: (i, 0)),   # row tile, lo
            pl.BlockSpec((TC, Dp), lambda i, j: (j, 0)),   # column tile, hi
            pl.BlockSpec((TC, Dp), lambda i, j: (j, 0)),   # column tile, lo
            pl.BlockSpec((TR, 1), lambda i, j: (i, 0)),    # positives / T
        ],
        out_specs=pl.BlockSpec((TR, 1), lambda i, j: (i, 0)),
        scratch_shapes=[pltpu.VMEM((TR, 1), jnp.float32)],  # running shifted denominator
    )

    per_row = pl.pallas_call(
        functools.partial(_ntxent_kernel, inv_t=inv_t),
        out_shape=jax.ShapeDtypeStruct((N, 1), jnp.float32),
        grid_spec=grid_spec,
        compiler_params=pltpu.CompilerParams(
            dimension_semantics=("parallel", "arbitrary"),
            vmem_limit_bytes=vmem_limit,
        ),
        cost_estimate=cost,
    )(z_hi, z_lo, z_hi, z_lo, pos)

    # Final scalar mean over the 2B per-row losses — tiny glue reduction.
    return jnp.sum(per_row) / jnp.float32(N)


def _ntxent_loss_ref(z_i, z_j, temperature):
    """Pure-JAX reference (mirrors the PyTorch forward exactly, f32 HIGHEST matmul)."""
    b = z_i.shape[0]
    z = jnp.concatenate([z_i, z_j], axis=0)
    z = z / jnp.maximum(jnp.linalg.norm(z, axis=1, keepdims=True), _EPS)
    sim = jnp.matmul(z, z.T, precision=jax.lax.Precision.HIGHEST)
    sim_ij = jnp.diagonal(sim, offset=b)
    sim_ji = jnp.diagonal(sim, offset=-b)
    positives = jnp.concatenate([sim_ij, sim_ji], axis=0)
    nominator = jnp.exp(positives / temperature)
    mask = 1.0 - jnp.eye(2 * b, dtype=jnp.float32)
    denominator = jnp.sum(mask * jnp.exp(sim / temperature), axis=1)
    loss_partial = -jnp.log(nominator / denominator)
    return jnp.sum(loss_partial) / (2 * b)


if __name__ == "__main__":
    key = jax.random.PRNGKey(0)
    k1, k2, k3, k4 = jax.random.split(key, 4)
    temperature = 0.5

    # Case 1: B=8, D=32 (padded to K=128), default tiling -> resident column slab, grid (2, 1).
    B, D = 8, 32
    z_i = jax.random.normal(k1, (B, D), dtype=jnp.float32)
    z_j = jax.random.normal(k2, (B, D), dtype=jnp.float32)
    ref = jax.block_until_ready(_ntxent_loss_ref(z_i, z_j, temperature))
    out = jax.block_until_ready(ntxent_loss(z_i, z_j, temperature))
    assert jnp.isfinite(out), "non-finite loss"
    assert jnp.allclose(out, ref, rtol=2e-4, atol=2e-4), (out, ref)

    # Case 2: forced small tiles -> grid (2, 2): exercises the multi-step column reduction
    # (pl.when init / finalize on the accumulator) and diagonal masking across blocks.
    out2 = jax.block_until_ready(ntxent_loss(z_i, z_j, temperature, row_tile=8, col_tile=8))
    assert jnp.isfinite(out2), "non-finite loss (tiled)"
    assert jnp.allclose(out2, ref, rtol=2e-4, atol=2e-4), (out2, ref)

    # Case 3: small temperature — the 1/T shift + exact diagonal mask keep f32 well-behaved.
    t_small = 0.05
    ref3 = jax.block_until_ready(_ntxent_loss_ref(z_i, z_j, t_small))
    out3 = jax.block_until_ready(ntxent_loss(z_i, z_j, t_small))
    assert jnp.isfinite(out3), "non-finite loss (small T)"
    assert jnp.allclose(out3, ref3, rtol=1e-3, atol=1e-3), (out3, ref3)

    # Case 4: B=16, D=96 with asymmetric forced tiles -> grid (4, 2).
    z_i4 = jax.random.normal(k3, (16, 96), dtype=jnp.float32)
    z_j4 = jax.random.normal(k4, (16, 96), dtype=jnp.float32)
    ref4 = jax.block_until_ready(_ntxent_loss_ref(z_i4, z_j4, temperature))
    out4 = jax.block_until_ready(ntxent_loss(z_i4, z_j4, temperature, row_tile=8, col_tile=16))
    assert jnp.isfinite(out4), "non-finite loss (asymmetric tiles)"
    assert jnp.allclose(out4, ref4, rtol=2e-4, atol=2e-4), (out4, ref4)

    print("KERNEL_OK")
</pallas_src>

<mosaic_0001>
module attributes {stable_mosaic.version = 11 : i64} {
  func.func @_ntxent_kernel(%arg0: i32, %arg1: i32, %arg2: memref<8x128xbf16, #tpu.memory_space<vmem>>, %arg3: memref<8x128xbf16, #tpu.memory_space<vmem>>, %arg4: memref<16x128xbf16, #tpu.memory_space<vmem>>, %arg5: memref<16x128xbf16, #tpu.memory_space<vmem>>, %arg6: memref<8x1xf32, #tpu.memory_space<vmem>>, %arg7: memref<8x1xf32, #tpu.memory_space<vmem>>, %arg8: memref<8x1xf32, #tpu.memory_space<vmem>>) attributes {dimension_semantics = [#tpu.dimension_semantics<parallel>, #tpu.dimension_semantics<arbitrary>], iteration_bounds = array<i64: 2, 1>, scalar_prefetch = 0 : i64, scratch_operands = 1 : i64, tpu.core_type = #tpu.core_type<tc>, window_params = [{transform_indices = @transform_0, window_bounds = array<i64: 8, 128>}, {transform_indices = @transform_1, window_bounds = array<i64: 8, 128>}, {transform_indices = @transform_2, window_bounds = array<i64: 16, 128>}, {transform_indices = @transform_3, window_bounds = array<i64: 16, 128>}, {transform_indices = @transform_4, window_bounds = array<i64: 8, 1>}, {transform_indices = @transform_5, window_bounds = array<i64: 8, 1>}]} {
    %c0_i32 = arith.constant 0 : i32
    %0 = arith.cmpi eq, %arg1, %c0_i32 : i32
    %1 = arith.extui %0 : i1 to i32
    %c0_i32_0 = arith.constant 0 : i32
    %2 = arith.cmpi ne, %1, %c0_i32_0 : i32
    scf.if %2 {
      %cst_19 = arith.constant 0.000000e+00 : f32
      %34 = vector.broadcast %cst_19 : f32 to vector<8x1xf32>
      %c0_20 = arith.constant 0 : index
      %c0_21 = arith.constant 0 : index
      %35 = vector.load %arg8[%c0_20, %c0_21] : memref<8x1xf32, #tpu.memory_space<vmem>>, vector<8x1xf32>
      tpu.vector_store %arg8[%c0_20, %c0_21], %34 {strides = array<i32>} : memref<8x1xf32, #tpu.memory_space<vmem>>, vector<8x1xf32>,
    } else {
    }
    %c0 = arith.constant 0 : index
    %c0_1 = arith.constant 0 : index
    %3 = vector.load %arg2[%c0, %c0_1] : memref<8x128xbf16, #tpu.memory_space<vmem>>, vector<8x128xbf16>
    %c0_2 = arith.constant 0 : index
    %c0_3 = arith.constant 0 : index
    %4 = vector.load %arg3[%c0_2, %c0_3] : memref<8x128xbf16, #tpu.memory_space<vmem>>, vector<8x128xbf16>
    %c0_4 = arith.constant 0 : index
    %c0_5 = arith.constant 0 : index
    %5 = vector.load %arg4[%c0_4, %c0_5] : memref<16x128xbf16, #tpu.memory_space<vmem>>, vector<16x128xbf16>
    %c0_6 = arith.constant 0 : index
    %c0_7 = arith.constant 0 : index
    %6 = vector.load %arg5[%c0_6, %c0_7] : memref<16x128xbf16, #tpu.memory_space<vmem>>, vector<16x128xbf16>
    %cst = arith.constant dense<0.000000e+00> : vector<8x16xf32>
    %7 = tpu.matmul %3, %5, %cst {dimension_numbers = #tpu.dot_dimension_numbers<[1], [1], [0], [0], [0, 0, 1, 0], [], []>} : vector<8x128xbf16>, vector<16x128xbf16>, vector<8x16xf32> -> vector<8x16xf32>
    %cst_8 = arith.constant dense<0.000000e+00> : vector<8x16xf32>
    %8 = tpu.matmul %3, %6, %cst_8 {dimension_numbers = #tpu.dot_dimension_numbers<[1], [1], [0], [0], [0, 0, 1, 0], [], []>} : vector<8x128xbf16>, vector<16x128xbf16>, vector<8x16xf32> -> vector<8x16xf32>
    %9 = arith.addf %7, %8 : vector<8x16xf32>
    %cst_9 = arith.constant dense<0.000000e+00> : vector<8x16xf32>
    %10 = tpu.matmul %4, %5, %cst_9 {dimension_numbers = #tpu.dot_dimension_numbers<[1], [1], [0], [0], [0, 0, 1, 0], [], []>} : vector<8x128xbf16>, vector<16x128xbf16>, vector<8x16xf32> -> vector<8x16xf32>
    %11 = arith.addf %9, %10 : vector<8x16xf32>
    %c8_i32 = arith.constant 8 : i32
    %12 = arith.muli %arg0, %c8_i32 : i32
    %13 = tpu.iota {dimensions = array<i32: 0>} : vector<8x16xi32>
    %14 = vector.broadcast %12 : i32 to vector<8x16xi32>
    %15 = arith.addi %14, %13 : vector<8x16xi32>
    %c16_i32 = arith.constant 16 : i32
    %16 = arith.muli %arg1, %c16_i32 : i32
    %17 = tpu.iota {dimensions = array<i32: 1>} : vector<8x16xi32>
    %18 = vector.broadcast %16 : i32 to vector<8x16xi32>
    %19 = arith.addi %18, %17 : vector<8x16xi32>
    %20 = arith.cmpi eq, %15, %19 : vector<8x16xi32>
    %cst_10 = arith.constant 2.000000e+00 : f32
    %21 = vector.broadcast %cst_10 : f32 to vector<8x16xf32>
    %22 = arith.subf %11, %21 : vector<8x16xf32>
    %23 = math.exp %22 : vector<8x16xf32>
    %cst_11 = arith.constant 0.000000e+00 : f32
    %24 = vector.broadcast %cst_11 : f32 to vector<8x16xf32>
    %25 = arith.select %20, %24, %23 : vector<8x16xi1>, vector<8x16xf32>
    %c0_12 = arith.constant 0 : index
    %c0_13 = arith.constant 0 : index
    %26 = vector.load %arg8[%c0_12, %c0_13] : memref<8x1xf32, #tpu.memory_space<vmem>>, vector<8x1xf32>
    %cst_14 = arith.constant dense<0.000000e+00> : vector<8xf32>
    %27 = vector.multi_reduction <add>, %25, %cst_14 [1] : vector<8x16xf32> to vector<8xf32>
    %28 = vector.shape_cast %27 : vector<8xf32> to vector<8x1xf32>
    %29 = arith.addf %26, %28 : vector<8x1xf32>
    %c0_15 = arith.constant 0 : index
    %c0_16 = arith.constant 0 : index
    %30 = vector.load %arg8[%c0_15, %c0_16] : memref<8x1xf32, #tpu.memory_space<vmem>>, vector<8x1xf32>
    tpu.vector_store %arg8[%c0_15, %c0_16], %29 {strides = array<i32>} : memref<8x1xf32, #tpu.memory_space<vmem>>, vector<8x1xf32>,
    %c0_i32_17 = arith.constant 0 : i32
    %31 = arith.cmpi eq, %arg1, %c0_i32_17 : i32
    %32 = arith.extui %31 : i1 to i32
    %c0_i32_18 = arith.constant 0 : i32
    %33 = arith.cmpi ne, %32, %c0_i32_18 : i32
    scf.if %33 {
      %c0_19 = arith.constant 0 : index
      %c0_20 = arith.constant 0 : index
      %34 = vector.load %arg8[%c0_19, %c0_20] : memref<8x1xf32, #tpu.memory_space<vmem>>, vector<8x1xf32>
      %cst_21 = arith.constant 9.99999991E-38 : f32
      %35 = vector.broadcast %cst_21 : f32 to vector<8x1xf32>
      %36 = arith.maximumf %34, %35 : vector<8x1xf32>
      %37 = math.log %36 : vector<8x1xf32>
      %cst_22 = arith.constant 2.000000e+00 : f32
      %38 = vector.broadcast %cst_22 : f32 to vector<8x1xf32>
      %39 = arith.addf %37, %38 : vector<8x1xf32>
      %c0_23 = arith.constant 0 : index
      %c0_24 = arith.constant 0 : index
      %40 = vector.load %arg6[%c0_23, %c0_24] : memref<8x1xf32, #tpu.memory_space<vmem>>, vector<8x1xf32>
      %41 = arith.subf %39, %40 : vector<8x1xf32>
      %c0_25 = arith.constant 0 : index
      %c0_26 = arith.constant 0 : index
      %42 = vector.load %arg7[%c0_25, %c0_26] : memref<8x1xf32, #tpu.memory_space<vmem>>, vector<8x1xf32>
      tpu.vector_store %arg7[%c0_25, %c0_26], %41 {strides = array<i32>} : memref<8x1xf32, #tpu.memory_space<vmem>>, vector<8x1xf32>,
    } else {
    }
    return
  }
  func.func @transform_0(%arg0: i32, %arg1: i32) -> (i32, i32) {
    %c0_i32 = arith.constant 0 : i32
    %c0_i32_0 = arith.constant 0 : i32
    return %arg0, %c0_i32 : i32, i32
  }
  func.func @transform_1(%arg0: i32, %arg1: i32) -> (i32, i32) {
    %c0_i32 = arith.constant 0 : i32
    %c0_i32_0 = arith.constant 0 : i32
    return %arg0, %c0_i32 : i32, i32
  }
  func.func @transform_2(%arg0: i32, %arg1: i32) -> (i32, i32) {
    %c0_i32 = arith.constant 0 : i32
    %c0_i32_0 = arith.constant 0 : i32
    return %arg1, %c0_i32 : i32, i32
  }
  func.func @transform_3(%arg0: i32, %arg1: i32) -> (i32, i32) {
    %c0_i32 = arith.constant 0 : i32
    %c0_i32_0 = arith.constant 0 : i32
    return %arg1, %c0_i32 : i32, i32
  }
  func.func @transform_4(%arg0: i32, %arg1: i32) -> (i32, i32) {
    %c0_i32 = arith.constant 0 : i32
    %c0_i32_0 = arith.constant 0 : i32
    return %arg0, %c0_i32 : i32, i32
  }
  func.func @transform_5(%arg0: i32, %arg1: i32) -> (i32, i32) {
    %c0_i32 = arith.constant 0 : i32
    %c0_i32_0 = arith.constant 0 : i32
    return %arg0, %c0_i32 : i32, i32
  }
}

</mosaic_0001>

<bundles_post_ra>
// kernel: tpu_custom_call.1
= control target key start
LH: loop header
LB: loop body
LE: loop exit
PB: predicated region body
PF: predicated region fallthrough
CT: control target
= control target key end

     0   :  { %10 = vsyncpa [#allocation4], 0  ;;  %s785_s18 = smov 0   ;;  %s787_s19 = smov 0   ;;  %s878_s0 = inlined_call_operand.vmem [shape: bf16[16,128], index: 0, kind: input, shape index: {}]   ;;  %s879_s1 = inlined_call_operand.vmem [shape: bf16[16,128], index: 1, kind: input, shape index: {}]   ;;  %s880_s2 = inlined_call_operand.vmem [shape: bf16[16,128], index: 2, kind: input, shape index: {}]   ;;  %s881_s3 = inlined_call_operand.hbm [shape: bf16[16,128], index: 3, kind: input, shape index: {}]   ;;  %s882_s4 = inlined_call_operand.vmem [shape: f32[16,1], index: 4, kind: input, shape index: {}]   ;;  %s883_s5 = inlined_call_operand.vmem [shape: f32[16,1], index: 5, kind: output, shape index: {}]  }
   0x1   :  { %s789_s20 = smov 0  }
   0x2 LB: > { %s607_s21 = sadd.s32 4294967295, %s748_s20   ;;  %s28_s22 = sadd.s32 1, %s744_s19  ;;  %s748_s20 = sphi %s789_s20, %s16_s20   ;;  %s744_s19 = sphi %s787_s19, %s893_s19   ;;  %s740_s18 = sphi %s785_s18, %s892_s18  }
   0x3   : > { %p30_p0 = scmp.ge.s32.totalorder %s28_s22, 2  ;;  %p609_p1 = scmp.ge.s32.totalorder %s748_s20, 1 }
   0x4   : > { %p189_p2 = scmp.lt.s32.totalorder %s748_s20, 3  ;;  %p810_p4 = scmp.eq.s32.totalorder %s607_s21, 0 }
   0x5   : > { %s895_s22 = smov (%p30_p0, %s28_s22), 0  ;;  %s750_s25 = smov [#allocation3]  }
   0x6   : > { %p806_p3 = pnand %p609_p1, %p189_p2  ;;  %s213_s26 = sshll.u32 %s750_s25, 4  ;;  %s214_s26 = int_to_ptr.vmem [resolvable:$true] %s213_s26 }
   0x7   : > { %s888_s24 = scalar_select %p810_p4, 1, 0 }
   0x8   : > { %s887_s23 = scalar_select %p806_p3, 1, 0 }
   0x9   : > { %p653_p5 = pneg %p806_p3  ;;  %s694_s30 = scalar_lea.hbm %s881_s3, 128 }
   0xa   : > { %p695_p7 = scmp.ne.s32.totalorder %s881_s3, %s694_s30  ;;  %p701_p11 = scmp.lt.u32.totalorder %s694_s30, %s881_s3 }
   0xb   : > { %p818_p6 = pnand %p810_p4, %p653_p5 }
   0xd   : > { %p696_p8 = pneg %p818_p6 }
   0xf   : > { %p697_p9 = pnand %p696_p8, %p695_p7 }
  0x11   : > { %p698_p10 = pneg %p697_p9 }
  0x13   : > { %p703_p12 = pnand %p701_p11, %p698_p10 }
  0x15   : > { %706 = shalt.err (!%p703_p12)
}
  0x16   : > { %s707_s10 = scalar_lea.vmem %s214_s26, 128  ;;  %p715_p2 = scmp.lt.s32.totalorder %s214_s26, %s214_s26 }
  0x17   : > { %p708_p13 = scmp.ne.s32.totalorder %s214_s26, %s707_s10  ;;  %p716_p5 = scmp.lt.s32.totalorder %s707_s10, %s707_s10 }
  0x19   : > { %p710_p0 = pnand %p708_p13, %p696_p8  ;;  %p717_p4 = por %p716_p5, %p715_p2 }
  0x1b   : > { %p711_p1 = pneg %p710_p0 }
  0x1d   : > { %p718_p3 = pnand %p717_p4, %p711_p1 }
  0x1f   : > { %721 = shalt.err (!%p718_p3)
}
  0x20   : > { %s751_s11 = smov 64   ;;  %s752_s12 = smov 4  }
  0x21   : > { %656 = dma.hbm_to_vmem [thread:$0]  (!%p818_p6), %s881_s3, 128, %s214_s26, [#allocation4], %s751_s11, %s751_s11, %s752_s12  }
  0x22   : > { %p890_p7 = scmp.ne.s32.totalorder %s887_s23, 0 }
  0x23   : > { %p891_p9 = scmp.ne.s32.totalorder (!%p890_p7), %s888_s24, 0 }
  0x24   : > { %250 = sbr.rel (%p890_p7) target bundleno = 465 (0x1d1), region = 40 }
  0x2b   : > { %735 = dma.done.wait (%p891_p9), [#allocation4], 128  }
  0x2c   : > { %737 = vsyncadd (%p891_p9), [#allocation4], 4294967168  ;;  %p289_p3 = scmp.lt.s32.totalorder %s740_s18, 1  ;;  %v753_v0 = vmov 0.0   ;;  %vm754_vm0 = vmmov 0   ;;  %v688_v1 = vld [vmem:[#allocation3] sm:$0xff]   ;;  %v459_v20 = vlaneseq }
  0x2d   : > { %631 = vmatprep.subr.bf16.mxu0 %v753_v0  ;;  %637 = vmatprep.subr.bf16.mxu1 %v753_v0  ;;  %v689_v2 = vld [vmem:[%s880_s2] sm:$0xff]   ;;  %vm317_vm1 = vcmask 7168   ;;  %s621_s29 = sshll.u32 %s740_s18, 3  ;;  %vm474_vm3 = vcmask 130048  }
  0x2e   : > { %633 = vmatprep.mubr.msk.bf16.mxu0 %vm754_vm0, %v753_v0  ;;  %639 = vmatprep.mubr.msk.bf16.mxu1 %vm754_vm0, %v753_v0  ;;  %s846_s15 = scalar_select %p289_p3, %s740_s18, 1  ;;  %318 = vst.msk [vmem:[#allocation2] sm:$0xff] %vm317_vm1, %v753_v0  ;;  %v460_v22 = vshrl.u32 %v459_v20, 7  ;;  %v461_v23 = vstv %s621_s29  ;;  %v465_v25 = vand.u32 127, %v459_v20 }
  0x2f   : > { %632 = vmatpush3.bf16.xpose.msra.mxu0 %v688_v1  ;;  %638 = vmatpush3.bf16.xpose.msra.mxu1 %v689_v2 }
  0x30   : > { %s615_s16 = sshll.u32 %s846_s15, 2  ;;  %643 = vmatprep.subr.bf16.mxu0 %v753_v0  ;;  %v462_v24 = vadd.s32 %v461_v23, %v460_v22  ;;  %s617_s18 = sshll.u32 %s846_s15, 3 }
  0x31   : > { %s292_s25 = scalar_lea.vmem %s878_s0, %s615_s16  ;;  %s296_s28 = scalar_lea.vmem %s879_s1, %s615_s16 }
  0x32   : > { %v319_v3 = vld [vmem:[%s292_s25] sm:$0xf]  ;;  %vm468_vm2 = vcmp.eq.s32.totalorder %v462_v24, %v465_v25  ;;  %s307_s7 = scalar_lea.vmem %s882_s4, %s617_s18  ;;  %s311_s10 = scalar_lea.vmem %s883_s5, %s617_s18 }
  0x33   : > { %v320_v4 = vld [vmem:[%s296_s28] sm:$0xf] }
  0x34   : > { %v489_v36 = vld [vmem:[%s307_s7] sm:$0xff] }
  0x35   : > { %v473_v29 = vld [vmem:[#allocation2] sm:$0xff] }
  0x36   : > { %634 = vmatmul.mubr.bf16.vlgmr.msra.gmra.mrb[0].mxu0 %v319_v3  ;;  %640 = vmatmul.mubr.bf16.vlgmr.msra.gmra.mrb[0].mxu1 %v319_v3 }
  0x37   : > { %644 = vmatpush3.bf16.xpose.msra.mxu0 %v689_v2  ;;  %645 = vmatprep.mubr.msk.bf16.mxu0 %vm754_vm0, %v753_v0 }
  0x3e   : > { %646 = vmatmul.mubr.bf16.vlgmr.msra.gmra.mrb[4].mxu0 %v320_v4 }
 0x109   : > { %v365_v5 = vpop.f32.mrb[0].mxu0  ;;  %v411_v7 = vpop.f32.mrb[0].mxu1 }
 0x10a   : > { %v635_v6 = vpop.f32.mrb[1].mxu0  ;;  %v412_v8 = vadd.f32 %v411_v7, %v365_v5  ;;  %v641_v10 = vpop.f32.mrb[1].mxu1 }
 0x10b   : > { %v368_v9 = vpop.f32.mrb[2].mxu0  ;;  %v414_v12 = vpop.f32.mrb[2].mxu1 }
 0x10c   : > { %v636_v11 = vpop.f32.mrb[3].mxu0  ;;  %v642_v13 = vpop.f32.mrb[3].mxu1 }
 0x111   : > { %v451_v14 = vpop.f32.mrb[4].mxu0 }
 0x112   : > { %v457_v15 = vadd.f32 %v451_v14, %v412_v8  ;;  %v647_v16 = vpop.f32.mrb[5].mxu0 }
 0x113   : > { %v454_v17 = vpop.f32.mrb[6].mxu0 }
 0x114   : > { %v622_v18 = vadd.f32 -2.0, %v457_v15  ;;  %v648_v19 = vpop.f32.mrb[7].mxu0 }
 0x116   : > { %v470_v21 = vmul.f32 1.442695, %v622_v18 }
 0x118   : > { %690 = vpow2.f32 %v470_v21 }
 0x122   : > { %v691_v26 = vpop.eup %690 }
 0x123   : > { %v472_v27 = vsel %vm468_vm2, 0.0, %v691_v26 }
 0x124   : > { %v475_v28 = vsel %vm474_vm3, %v472_v27, 0.0 }
 0x125   : > { %476 = vadd.xlane.f32.xlu0 %v475_v28 }
 0x1b2   : > { %v477_v30 = vpop.xlane.xlu0 %476 }
 0x1b3   : > { %v478_v31 = vadd.f32 %v477_v30, %v473_v29 }
 0x1b5   : > { %480 = vst.msk [vmem:[#allocation2] sm:$0xff] %vm317_vm1, %v478_v31 }
 0x1bc   : > { %v484_v32 = vld [vmem:[#allocation2] sm:$0xff] }
 0x1bd   : > { %v485_v33 = vmax.f32 %v484_v32, 1e-37 }
 0x1bf   : > { %692 = vlog2.f32 %v485_v33 }
 0x1c9   : > { %v693_v34 = vpop.eup %692 }
 0x1ca   : > { %v487_v35 = vmul.f32 0.6931472, %v693_v34 }
 0x1cc   : > { %v488_v37 = vadd.f32 2.0, %v487_v35 }
 0x1ce   : > { %v490_v38 = vsub.f32 %v488_v37, %v489_v36 }
 0x1d0   : > { %491 = vst.msk [vmem:[%s311_s10] sm:$0xff] %vm317_vm1, %v490_v38 }
 0x1d1 PF: > { %s16_s20 = sadd.s32 1, %s748_s20   ;;  %s892_s18 = smov %s744_s19 }
 0x1d2   : > { %p13_p4 = scmp.ge.s32.totalorder %s16_s20, 4   ;;  %s893_s19 = smov %s895_s22 }
 0x1d4   :  { %15 = sbr.rel (!%p13_p4) target bundleno = 2 (0x2), region = 93 }
 0x1db   :  { %511 = vsyncpa [#allocation4], 1 }
 0x1dc   :  { %513 = vsyncpa [#allocation4 + $0x1], 1 }

</bundles_post_ra>
